<compile_context>
chip_gen: v5e
topology: v5e:2x2
jax: 0.10.0
libtpu: 0.0.40
codegen_flags: <defaults>
</compile_context>

<pallas_src>
import math

import jax
import jax.numpy as jnp
from jax.experimental import pallas as pl
from jax.experimental.pallas import tpu as pltpu

_LANE = 128      # lane width (last dim)
_SUBLANE = 8     # f32 sublane width (second-to-last dim)


def _round_up(n, m):
    return (n + m - 1) // m * m


def _cdiv(a, b):
    return (a + b - 1) // b


def _mlp_kernel(x_ref, w1_ref, b1_ref, w2_ref, b2_ref, o_ref):
    """One batch tile of y = sigmoid(relu(x @ W1 + b1) @ W2 + b2)."""
    # Cast the f32 x tile to bf16 in-register for the MXU; accumulate in f32.
    x_bf = x_ref[...].astype(jnp.bfloat16)
    h = jnp.dot(x_bf, w1_ref[...], preferred_element_type=jnp.float32)
    # Bias + ReLU in f32 on the VPU (v5e has no bf16 VPU path).
    h = jnp.maximum(h + b1_ref[...], 0.0)

    # Layer 2: bf16 MXU matmul, f32 accumulation.
    z = jnp.dot(h.astype(jnp.bfloat16), w2_ref[...],
                preferred_element_type=jnp.float32)
    z = z + b2_ref[...]

    # sigmoid(z) = 0.5 * (tanh(z/2) + 1): a single EUP op (tanh) per element.
    o_ref[...] = (0.5 * jnp.tanh(0.5 * z) + 0.5).astype(o_ref.dtype)


def prepare_params(w1, b1, w2, b2):
    """One-time parameter prep, hoisted OUT of the forward path.

    Takes PyTorch-layout params (w1: (hidden, in), b1: (hidden,),
    w2: (out, hidden), b2: (out,)), transposes the weights so the kernel does
    x @ W directly, casts MXU operands to bf16 and keeps biases as f32 rows.
    Cache the returned tuple and reuse it for every forward call.
    """
    w1_t = jnp.asarray(w1, jnp.float32).T.astype(jnp.bfloat16)   # (in, hidden)
    w2_t = jnp.asarray(w2, jnp.float32).T.astype(jnp.bfloat16)   # (hidden, out)
    b1_r = jnp.asarray(b1, jnp.float32).reshape(1, -1)           # (1, hidden)
    b2_r = jnp.asarray(b2, jnp.float32).reshape(1, -1)           # (1, out)
    return w1_t, b1_r, w2_t, b2_r


def mlp_forward(x, params, *, block_batch=1024, out_dtype=jnp.bfloat16):
    """x: (B, in_dim) float32, params from prepare_params -> (B, out_dim)."""
    w1_t, b1, w2_t, b2 = params
    B, in_dim = x.shape
    hidden_dim = w1_t.shape[1]
    out_dim = w2_t.shape[1]

    # --- batch tile selection -------------------------------------------------
    # Big tiles (default 1024) for HBM-roofline DMAs; cdiv grid with a masked
    # boundary block avoids computing/storing garbage padded rows.  When B fits
    # in one tile, split into ~2 tiles so the "parallel" axis can shard across
    # v7x's two TensorCores (no effect on single-TC v5e/v6e).
    if B <= _SUBLANE:
        tb = B                                   # block dim == full array dim
    else:
        tb = min(block_batch, _round_up(B, _SUBLANE))
        if _cdiv(B, tb) < 2:
            tb = _round_up(_cdiv(B, 2), _SUBLANE)
    grid = (_cdiv(B, tb),)

    # --- generation-aware VMEM budget ----------------------------------------
    in_p = _round_up(in_dim, _LANE)
    hid_p = _round_up(hidden_dim, _LANE)
    out_p = _round_up(out_dim, _LANE)
    tb_p = _round_up(tb, _SUBLANE)
    est = (
        2 * tb_p * in_p * 4                          # x tile, f32, 2 buffers
        + 2 * tb_p * out_p * 2                       # out tile, bf16, 2 buffers
        + 2 * (in_p * hid_p + hid_p * out_p) * 2     # resident bf16 weights
        + 2 * _SUBLANE * (hid_p + out_p) * 4         # biases, f32
        + tb_p * (in_p * 2 + hid_p * 6 + out_p * 4)  # in-kernel intermediates
    )
    try:
        vmem_cap = int(pltpu.get_tpu_info().vmem_capacity_bytes)
    except Exception:  # conservative fallback (v7x per-TC VMEM)
        vmem_cap = 64 * 1024 * 1024
    vmem_limit = int(min(vmem_cap - (2 << 20), max(est + (4 << 20), 16 << 20)))

    return pl.pallas_call(
        _mlp_kernel,
        out_shape=jax.ShapeDtypeStruct((B, out_dim), out_dtype),
        grid=grid,
        in_specs=[
            pl.BlockSpec((tb, in_dim), lambda i: (i, 0)),          # x: batch-tiled
            pl.BlockSpec((in_dim, hidden_dim), lambda i: (0, 0)),  # W1: resident
            pl.BlockSpec((1, hidden_dim), lambda i: (0, 0)),       # b1: resident
            pl.BlockSpec((hidden_dim, out_dim), lambda i: (0, 0)),  # W2: resident
            pl.BlockSpec((1, out_dim), lambda i: (0, 0)),          # b2: resident
        ],
        out_specs=pl.BlockSpec((tb, out_dim), lambda i: (i, 0)),
        compiler_params=pltpu.CompilerParams(
            dimension_semantics=("parallel",),
            vmem_limit_bytes=vmem_limit,
        ),
    )(x, w1_t, b1, w2_t, b2)


def init_params(key, input_dim, hidden_dim, output_dim, dtype=jnp.float32):
    """Deterministic init matching the PyTorch module's __init__ semantics.

    Returns PyTorch-layout (w1, b1, w2, b2); feed through prepare_params once.
    """
    k1w, k1b, k2w, k2b = jax.random.split(key, 4)

    # layer_1.weight: kaiming_uniform_(nonlinearity='relu')
    #   gain = sqrt(2), bound = gain * sqrt(3 / fan_in) = sqrt(6 / fan_in)
    bound1_w = math.sqrt(6.0 / input_dim)
    w1 = jax.random.uniform(k1w, (hidden_dim, input_dim), dtype,
                            minval=-bound1_w, maxval=bound1_w)
    # layer_1.bias: default Linear init, U(-1/sqrt(fan_in), 1/sqrt(fan_in))
    bound1_b = 1.0 / math.sqrt(input_dim)
    b1 = jax.random.uniform(k1b, (hidden_dim,), dtype,
                            minval=-bound1_b, maxval=bound1_b)

    # layer_2: default Linear init for both weight and bias
    bound2 = 1.0 / math.sqrt(hidden_dim)
    w2 = jax.random.uniform(k2w, (output_dim, hidden_dim), dtype,
                            minval=-bound2, maxval=bound2)
    b2 = jax.random.uniform(k2b, (output_dim,), dtype,
                            minval=-bound2, maxval=bound2)
    return w1, b1, w2, b2


if __name__ == "__main__":
    batch, input_dim, hidden_dim, output_dim = 8, 32, 64, 16

    key = jax.random.PRNGKey(0)
    kx, kp = jax.random.split(key)
    x = jax.random.normal(kx, (batch, input_dim), jnp.float32)
    w1, b1, w2, b2 = init_params(kp, input_dim, hidden_dim, output_dim)

    # One-time parameter prep (hoisted out of the forward path; reuse across calls).
    params = prepare_params(w1, b1, w2, b2)

    y = mlp_forward(x, params)
    jax.block_until_ready(y)

    # Pure-JAX f32 reference (kernel uses bf16 MXU operands and a bf16 output,
    # so compare with a loose but meaningful tolerance).
    h_ref = jnp.maximum(x @ w1.T + b1[None, :], 0.0)
    y_ref = jax.nn.sigmoid(h_ref @ w2.T + b2[None, :])
    assert y.shape == (batch, output_dim)
    assert jnp.allclose(y.astype(jnp.float32), y_ref, atol=2e-2, rtol=2e-2)

    print("KERNEL_OK")
</pallas_src>

<mosaic_0001>
module attributes {stable_mosaic.version = 11 : i64} {
  func.func @_mlp_kernel(%arg0: i32, %arg1: memref<8x32xf32, #tpu.memory_space<vmem>>, %arg2: memref<32x64xbf16, #tpu.memory_space<vmem>>, %arg3: memref<1x64xf32, #tpu.memory_space<vmem>>, %arg4: memref<64x16xbf16, #tpu.memory_space<vmem>>, %arg5: memref<1x16xf32, #tpu.memory_space<vmem>>, %arg6: memref<8x16xbf16, #tpu.memory_space<vmem>>) attributes {dimension_semantics = [#tpu.dimension_semantics<parallel>], iteration_bounds = array<i64: 1>, scalar_prefetch = 0 : i64, scratch_operands = 0 : i64, tpu.core_type = #tpu.core_type<tc>, window_params = [{transform_indices = @transform_0, window_bounds = array<i64: 8, 32>}, {pipeline_mode = #tpu.pipeline_mode<synchronous>, transform_indices = @transform_1, window_bounds = array<i64: 32, 64>}, {pipeline_mode = #tpu.pipeline_mode<synchronous>, transform_indices = @transform_2, window_bounds = array<i64: 1, 64>}, {pipeline_mode = #tpu.pipeline_mode<synchronous>, transform_indices = @transform_3, window_bounds = array<i64: 64, 16>}, {pipeline_mode = #tpu.pipeline_mode<synchronous>, transform_indices = @transform_4, window_bounds = array<i64: 1, 16>}, {transform_indices = @transform_5, window_bounds = array<i64: 8, 16>}]} {
    %c0 = arith.constant 0 : index
    %c0_0 = arith.constant 0 : index
    %0 = vector.load %arg1[%c0, %c0_0] : memref<8x32xf32, #tpu.memory_space<vmem>>, vector<8x32xf32>
    %1 = arith.truncf %0 : vector<8x32xf32> to vector<8x32xbf16>
    %c0_1 = arith.constant 0 : index
    %c0_2 = arith.constant 0 : index
    %2 = vector.load %arg2[%c0_1, %c0_2] : memref<32x64xbf16, #tpu.memory_space<vmem>>, vector<32x64xbf16>
    %cst = arith.constant dense<0.000000e+00> : vector<8x64xf32>
    %3 = tpu.matmul %1, %2, %cst {dimension_numbers = #tpu.dot_dimension_numbers<[1], [0], [0], [1], [0, 0, 1, 1], [], []>} : vector<8x32xbf16>, vector<32x64xbf16>, vector<8x64xf32> -> vector<8x64xf32>
    %c0_3 = arith.constant 0 : index
    %c0_4 = arith.constant 0 : index
    %4 = vector.load %arg3[%c0_3, %c0_4] : memref<1x64xf32, #tpu.memory_space<vmem>>, vector<1x64xf32>
    %5 = vector.broadcast %4 : vector<1x64xf32> to vector<8x64xf32>
    %6 = arith.addf %3, %5 : vector<8x64xf32>
    %cst_5 = arith.constant 0.000000e+00 : f32
    %7 = vector.broadcast %cst_5 : f32 to vector<8x64xf32>
    %8 = arith.maximumf %6, %7 : vector<8x64xf32>
    %9 = arith.truncf %8 : vector<8x64xf32> to vector<8x64xbf16>
    %c0_6 = arith.constant 0 : index
    %c0_7 = arith.constant 0 : index
    %10 = vector.load %arg4[%c0_6, %c0_7] : memref<64x16xbf16, #tpu.memory_space<vmem>>, vector<64x16xbf16>
    %cst_8 = arith.constant dense<0.000000e+00> : vector<8x16xf32>
    %11 = tpu.matmul %9, %10, %cst_8 {dimension_numbers = #tpu.dot_dimension_numbers<[1], [0], [0], [1], [0, 0, 1, 1], [], []>} : vector<8x64xbf16>, vector<64x16xbf16>, vector<8x16xf32> -> vector<8x16xf32>
    %c0_9 = arith.constant 0 : index
    %c0_10 = arith.constant 0 : index
    %12 = vector.load %arg5[%c0_9, %c0_10] : memref<1x16xf32, #tpu.memory_space<vmem>>, vector<1x16xf32>
    %13 = vector.broadcast %12 : vector<1x16xf32> to vector<8x16xf32>
    %14 = arith.addf %11, %13 : vector<8x16xf32>
    %cst_11 = arith.constant 5.000000e-01 : f32
    %15 = vector.broadcast %cst_11 : f32 to vector<8x16xf32>
    %16 = arith.mulf %15, %14 : vector<8x16xf32>
    %17 = math.tanh %16 : vector<8x16xf32>
    %cst_12 = arith.constant 5.000000e-01 : f32
    %18 = vector.broadcast %cst_12 : f32 to vector<8x16xf32>
    %19 = arith.mulf %18, %17 : vector<8x16xf32>
    %cst_13 = arith.constant 5.000000e-01 : f32
    %20 = vector.broadcast %cst_13 : f32 to vector<8x16xf32>
    %21 = arith.addf %19, %20 : vector<8x16xf32>
    %22 = arith.truncf %21 : vector<8x16xf32> to vector<8x16xbf16>
    %c0_14 = arith.constant 0 : index
    %c0_15 = arith.constant 0 : index
    %23 = vector.load %arg6[%c0_14, %c0_15] : memref<8x16xbf16, #tpu.memory_space<vmem>>, vector<8x16xbf16>
    tpu.vector_store %arg6[%c0_14, %c0_15], %22 {strides = array<i32>} : memref<8x16xbf16, #tpu.memory_space<vmem>>, vector<8x16xbf16>,
    return
  }
  func.func @transform_0(%arg0: i32) -> (i32, i32) {
    %c0_i32 = arith.constant 0 : i32
    %c0_i32_0 = arith.constant 0 : i32
    return %arg0, %c0_i32 : i32, i32
  }
  func.func @transform_1(%arg0: i32) -> (i32, i32) {
    %c0_i32 = arith.constant 0 : i32
    %c0_i32_0 = arith.constant 0 : i32
    %c0_i32_1 = arith.constant 0 : i32
    return %c0_i32, %c0_i32_0 : i32, i32
  }
  func.func @transform_2(%arg0: i32) -> (i32, i32) {
    %c0_i32 = arith.constant 0 : i32
    %c0_i32_0 = arith.constant 0 : i32
    %c0_i32_1 = arith.constant 0 : i32
    return %c0_i32, %c0_i32_0 : i32, i32
  }
  func.func @transform_3(%arg0: i32) -> (i32, i32) {
    %c0_i32 = arith.constant 0 : i32
    %c0_i32_0 = arith.constant 0 : i32
    %c0_i32_1 = arith.constant 0 : i32
    return %c0_i32, %c0_i32_0 : i32, i32
  }
  func.func @transform_4(%arg0: i32) -> (i32, i32) {
    %c0_i32 = arith.constant 0 : i32
    %c0_i32_0 = arith.constant 0 : i32
    %c0_i32_1 = arith.constant 0 : i32
    return %c0_i32, %c0_i32_0 : i32, i32
  }
  func.func @transform_5(%arg0: i32) -> (i32, i32) {
    %c0_i32 = arith.constant 0 : i32
    %c0_i32_0 = arith.constant 0 : i32
    return %arg0, %c0_i32 : i32, i32
  }
}

</mosaic_0001>

<bundles_post_ra>
// kernel: tpu_custom_call.1
= control target key start
LH: loop header
LB: loop body
LE: loop exit
PB: predicated region body
PF: predicated region fallthrough
CT: control target
= control target key end

     0   :  { %s263_s0 = inlined_call_operand.vmem [shape: f32[8,32], index: 0, kind: input, shape index: {}]   ;;  %s264_s1 = inlined_call_operand.vmem [shape: bf16[32,64], index: 1, kind: input, shape index: {}]   ;;  %s265_s2 = inlined_call_operand.vmem [shape: f32[1,64], index: 2, kind: input, shape index: {}]   ;;  %s266_s3 = inlined_call_operand.vmem [shape: bf16[64,16], index: 3, kind: input, shape index: {}]   ;;  %s267_s4 = inlined_call_operand.vmem [shape: f32[1,16], index: 4, kind: input, shape index: {}]   ;;  %s268_s5 = inlined_call_operand.hbm [shape: bf16[8,16], index: 5, kind: output, shape index: {}]  }
   0x1   :  { %v166_v0 = vld [vmem:[%s264_s1 + $0x8] sm:$0xff]  ;;  %v165_v1 = vld [vmem:[%s264_s1] sm:$0xff]  ;;  %v170_v2 = vld [vmem:[%s266_s3 + $0x18] sm:$0xff] }
   0x2   :  { %54 = vmatpush.bf16.msra.mxu0 %v166_v0  ;;  %v22_v3 = vld [vmem:[%s263_s0] sm:$0xff] }
   0x3   :  { %10 = vsyncpa [#allocation3], 0  ;;  %107 = vmatpush.bf16.msra.mxu1 %v170_v2  ;;  %v169_v4 = vld [vmem:[%s266_s3 + $0x10] sm:$0xff]  ;;  %v23_v5 = vpack.c.bf16 %v22_v3, %v22_v3  ;;  %vm44_vm0 = vcmask 261120   ;;  %v168_v6 = vld [vmem:[%s266_s3 + $0x8] sm:$0xff]  ;;  %vm99_vm1 = vcmask 523264  }
   0x4   :  { %v167_v7 = vld [vmem:[%s266_s3] sm:$0xff]  ;;  %s202_s3 = smov [#allocation2]   ;;  %s130_s11 = sshll.u32 %s268_s5, 4  ;;  %vm121_vm2 = vcmask 125952   ;;  %s131_s11 = int_to_ptr.hbm [resolvable:$true] %s130_s11 }
   0x5   :  { %v172_v8 = vld [vmem:[%s265_s2] ss:$0 sm:$0xff]  ;;  %s128_s2 = sshll.u32 %s202_s3, 4  ;;  %s129_s2 = int_to_ptr.vmem [resolvable:$true] %s128_s2 }
   0x6   :  { %55 = vmatpush.bf16.msra.mxu0 %v165_v1  ;;  %v173_v14 = vld [vmem:[%s267_s4] ss:$0 sm:$0xff] }
   0x7   :  { %108 = vmatpush.bf16.msra.mxu1 %v169_v4 }
   0x9   :  { %147 = vmatmul.msk.bf16.vlgmr.msra.gmra.mxu0 %vm44_vm0, %v23_v5 }
   0xb   :  { %109 = vmatpush.bf16.msra.mxu1 %v168_v6 }
   0xf   :  { %110 = vmatpush.bf16.msra.mxu1 %v167_v7 }
  0x86   :  { %v57_v9 = vpop.f32.mrf.mxu0 }
  0x87   :  { %v58_v10 = vadd.f32 %v172_v8, %v57_v9 }
  0x89   :  { %v61_v11 = vmax.f32 %v58_v10, 0.0 }
  0x8b   :  { %v62_v12 = vpack.c.bf16 %v61_v11, %v61_v11 }
  0x8d   :  { %164 = vmatmul.msk.bf16.vlgmr.msra.gmra.mxu1 %vm99_vm1, %v62_v12 }
  0x8e   :  { %v59_v13 = vpop.f32.mrf.mxu0 }
 0x10a   :  { %v112_v15 = vpop.f32.mrf.mxu1 }
 0x10b   :  { %v113_v16 = vadd.f32 %v173_v14, %v112_v15 }
 0x10d   :  { %v116_v17 = vmul.f32 0.5, %v113_v16 }
 0x10f   :  { %174 = vtanh.f32 %v116_v17 }
 0x112   :  { %v114_v18 = vpop.f32.mrf.mxu1 }
 0x115   :  { %v175_v19 = vpop.eup %174 }
 0x116   :  { %v118_v20 = vmul.f32 0.5, %v175_v19 }
 0x118   :  { %v119_v21 = vadd.f32 0.5, %v118_v20 }
 0x11a   :  { %v120_v22 = vpack.c.bf16 %v119_v21, %v119_v21 }
 0x11c   :  { %122 = vst.msk [vmem:[#allocation2] sm:$0xf] %vm121_vm2, %v120_v22 }
 0x11d   :  { %133 = dma.vmem_to_hbm [thread:$0]  %s129_s2, 64, %s131_s11, [#allocation3]  }
 0x11e   :  { %200 = dma.done.wait [#allocation3], 64  }
 0x11f   :  { %201 = vsyncadd [#allocation3], 4294967232 }
 0x120   :  { %138 = vsyncpa [#allocation3], 1 }

</bundles_post_ra>
